<compile_context>
chip_gen: v6e
topology: v6e:2x2x1
jax: 0.10.0
libtpu: 0.0.40
codegen_flags: <defaults>
</compile_context>

<pallas_src>
import math
import functools

import jax
import jax.numpy as jnp
from jax import lax
from jax.experimental import pallas as pl
from jax.experimental.pallas import tpu as pltpu


# ----------------------------- config (small) -------------------------------
B = 2            # batch
S = 8            # sequence length
H = 32           # hidden_size
NH = 4           # num_attention_heads
HD = H // NH     # head dim
NHS = NH * S     # head-expanded key-slot axis
I = 128          # intermediate_size
LN_EPS = 1e-12   # layer_norm_eps

PW = 128         # packed small-vector row width (lane-dense)
# weight slab column layout; every piece starts on a 128-lane boundary so the
# in-kernel static slices never need a lane rotate.
SLAB_W1 = 0          # (H, I)   cols [0, 128)
SLAB_QKV = 128       # (H, 3H)  cols [128, 224)
SLAB_WO = 256        # (H, H)   cols [256, 288)
SLAB_COLS = 384


def _layer_norm(x, gamma, beta, eps):
    mean = jnp.mean(x, axis=-1, keepdims=True)
    var = jnp.mean((x - mean) ** 2, axis=-1, keepdims=True)
    return (x - mean) * lax.rsqrt(var + eps) * gamma + beta


# --------------------------- fused BertLayer kernel ---------------------------
def bert_layer_kernel(x_ref, mask_ref, slab_ref, w2_ref, pv_ref, out_ref, *,
                      batch, seq, hidden, inter, num_heads, eps):
    f32 = jnp.float32
    bf16 = jnp.bfloat16
    hd = hidden // num_heads
    nhs = num_heads * seq

    x = x_ref[...].astype(f32)            # (B*S, H)  residual path stays f32
    mask = mask_ref[...].astype(f32)      # (B, 1, NH*S) additive key mask, head-tiled
    slab = slab_ref[...]                  # (H, SLAB_COLS) bf16 packed weights
    w2 = w2_ref[...]                      # (I, H) bf16
    pv = pv_ref[...].astype(f32)          # (4, PW) packed bias / LayerNorm vectors

    # ---- unpack small params (static lane slices) ----
    bqkv = pv[0:1, :3 * hidden]                  # (1, 3H)  (bq pre-scaled)
    b1   = pv[1:2, :inter]                       # (1, I)
    bo   = pv[2:3, 0 * hidden:1 * hidden]        # (1, H)
    g1   = pv[2:3, 1 * hidden:2 * hidden]
    be1  = pv[2:3, 2 * hidden:3 * hidden]
    b2   = pv[2:3, 3 * hidden:4 * hidden]
    g2   = pv[3:4, 0 * hidden:1 * hidden]
    be2  = pv[3:4, 1 * hidden:2 * hidden]

    # ---- 128-aligned slab slices (bf16 weights) ----
    w1   = slab[:, SLAB_W1:SLAB_W1 + inter]          # (H, I)
    wqkv = slab[:, SLAB_QKV:SLAB_QKV + 3 * hidden]   # (H, 3H)
    wo   = slab[:, SLAB_WO:SLAB_WO + hidden]         # (H, H)

    # ---- fused Q/K/V projection: one MXU push (M=B*S, K=H, N=3H) ----
    x_bf = x.astype(bf16)
    qkv = jnp.dot(x_bf, wqkv, preferred_element_type=f32) + bqkv     # (B*S, 3H) f32
    q = qkv[:, 0 * hidden:1 * hidden].reshape(batch, seq, hidden)    # 1/sqrt(HD) folded in
    k = qkv[:, 1 * hidden:2 * hidden].reshape(batch, seq, hidden)
    v = qkv[:, 2 * hidden:3 * hidden].reshape(batch, seq, hidden)

    # ---- multi-head attention core with NO per-head loop ---------------------
    # gc[r, c] = 1 iff key-slot r (= head*S + j) belongs to the head of channel c.
    # Built from integer iotas via float floor (avoids vector integer division).
    r_idx = lax.broadcasted_iota(jnp.int32, (nhs, hidden), 0).astype(f32)
    c_idx = lax.broadcasted_iota(jnp.int32, (nhs, hidden), 1).astype(f32)
    gc = (jnp.floor(r_idx * (1.0 / seq)) ==
          jnp.floor(c_idx * (1.0 / hd))).astype(f32)                 # (NH*S, H)

    # Block-diagonal head expansion of K and V along a (NH*S) key-slot axis.
    k_big = jnp.concatenate([k] * num_heads, axis=1) * gc[None]      # (B, NH*S, H)
    v_big = jnp.concatenate([v] * num_heads, axis=1) * gc[None]

    # scores[b, q, h*S+j] = <q_head_h[b,q,:], k_head_h[b,j,:]>  (one batched matmul)
    scores = jnp.einsum("bqc,brc->bqr", q.astype(bf16), k_big.astype(bf16),
                        preferred_element_type=f32)                  # (B, S, NH*S)
    scores = scores + mask                                           # single mask add
    # Row-global max is constant within each head's 8-slot group -> per-head safe.
    probs = jnp.exp(scores - jnp.max(scores, axis=-1, keepdims=True))

    # Unnormalized context and per-head softmax denominator (independent matmuls).
    ctx_u = jnp.einsum("bqr,brc->bqc", probs.astype(bf16), v_big.astype(bf16),
                       preferred_element_type=f32).reshape(batch * seq, hidden)
    denom = jnp.dot(probs.reshape(batch * seq, nhs), gc,
                    preferred_element_type=f32)                      # (B*S, H)
    ctx = ctx_u / denom                                              # exact divide

    # ---- BertSelfOutput: projection + residual + LayerNorm ----
    attn = jnp.dot(ctx.astype(bf16), wo, preferred_element_type=f32) + bo
    a = _layer_norm(attn + x, g1, be1, eps)

    # ---- BertIntermediate + BertOutput (FFN) ----
    # TODO(synk): HF BERT default "gelu" is erf-based; tanh-approx GELU used here.
    hmid = jnp.dot(a.astype(bf16), w1, preferred_element_type=f32) + b1
    hmid = jax.nn.gelu(hmid, approximate=True)
    y = jnp.dot(hmid.astype(bf16), w2, preferred_element_type=f32) + b2
    y = _layer_norm(y + a, g2, be2, eps)

    out_ref[...] = y.astype(out_ref.dtype)


# ------------------------------- wrappers ------------------------------------
def pack_params(p):
    """Host-side prep: fuse QKV (scale folded into Q), pack weights into one
    lane-dense bf16 slab, pack bias/LN vectors into one small f32 array."""
    scale = 1.0 / math.sqrt(HD)
    wqkv = jnp.concatenate([p["wq"] * scale, p["wk"], p["wv"]], axis=1)  # (H, 3H)
    bqkv = jnp.concatenate([p["bq"] * scale, p["bk"], p["bv"]], axis=1)  # (1, 3H)

    slab = jnp.zeros((H, SLAB_COLS), jnp.float32)
    slab = slab.at[:, SLAB_W1:SLAB_W1 + I].set(p["w1"])
    slab = slab.at[:, SLAB_QKV:SLAB_QKV + 3 * H].set(wqkv)
    slab = slab.at[:, SLAB_WO:SLAB_WO + H].set(p["wo"])

    pvec = jnp.zeros((4, PW), jnp.float32)
    pvec = pvec.at[0, :3 * H].set(bqkv[0])
    pvec = pvec.at[1, :I].set(p["b1"][0])
    pvec = pvec.at[2, 0 * H:1 * H].set(p["bo"][0])
    pvec = pvec.at[2, 1 * H:2 * H].set(p["attn_ln_g"][0])
    pvec = pvec.at[2, 2 * H:3 * H].set(p["attn_ln_b"][0])
    pvec = pvec.at[2, 3 * H:4 * H].set(p["b2"][0])
    pvec = pvec.at[3, 0 * H:1 * H].set(p["out_ln_g"][0])
    pvec = pvec.at[3, 1 * H:2 * H].set(p["out_ln_b"][0])

    return {"slab": slab.astype(jnp.bfloat16),
            "w2": p["w2"].astype(jnp.bfloat16),
            "pvec": pvec}


def bert_layer(x, mask, kp):
    b, s, h = x.shape
    x2 = x.reshape(b * s, h)                         # free XLA reshape outside kernel
    # tile the (B,1,S) additive key mask across heads: column h*S+j <- mask[b, j]
    mask_t = jnp.tile(mask.reshape(b, 1, s), (1, 1, NH))
    kernel = functools.partial(bert_layer_kernel, batch=b, seq=s, hidden=h,
                               inter=I, num_heads=NH, eps=LN_EPS)
    vmem = pl.BlockSpec(memory_space=pltpu.MemorySpace.VMEM)   # whole array in VMEM
    out2 = pl.pallas_call(
        kernel,
        out_shape=jax.ShapeDtypeStruct((b * s, h), x.dtype),
        in_specs=[vmem] * 5,        # no grid: single invocation, everything resident
        out_specs=vmem,
    )(x2, mask_t, kp["slab"], kp["w2"], kp["pvec"])
    return out2.reshape(b, s, h)


# ---------------------------- pure-JAX reference -----------------------------
def bert_layer_ref(x, mask, p):
    q = x @ p["wq"] + p["bq"][0]
    k = x @ p["wk"] + p["bk"][0]
    v = x @ p["wv"] + p["bv"][0]

    def split(t):  # (B,S,H) -> (B,NH,S,HD)
        return t.reshape(B, S, NH, HD).transpose(0, 2, 1, 3)

    qh, kh, vh = split(q), split(k), split(v)
    scores = jnp.einsum("bhqd,bhkd->bhqk", qh, kh) / math.sqrt(HD)
    scores = scores + mask[:, None, :, :]          # (B,1,1,S) broadcast
    probs = jax.nn.softmax(scores, axis=-1)
    ctx = jnp.einsum("bhqk,bhkd->bhqd", probs, vh)
    ctx = ctx.transpose(0, 2, 1, 3).reshape(B, S, H)
    attn = ctx @ p["wo"] + p["bo"][0]
    a = _layer_norm(attn + x, p["attn_ln_g"][0], p["attn_ln_b"][0], LN_EPS)
    h = jax.nn.gelu(a @ p["w1"] + p["b1"][0], approximate=True)
    y = h @ p["w2"] + p["b2"][0]
    return _layer_norm(y + a, p["out_ln_g"][0], p["out_ln_b"][0], LN_EPS)


# ---------------------------------- main --------------------------------------
if __name__ == "__main__":
    key = jax.random.PRNGKey(0)
    ks = jax.random.split(key, 16)

    def w(k, shape, scale=0.02):
        return (scale * jax.random.normal(k, shape)).astype(jnp.float32)

    params = {
        "wq": w(ks[0], (H, H)), "bq": w(ks[7], (1, H)),
        "wk": w(ks[1], (H, H)), "bk": w(ks[8], (1, H)),
        "wv": w(ks[2], (H, H)), "bv": w(ks[9], (1, H)),
        "wo": w(ks[3], (H, H)), "bo": w(ks[10], (1, H)),
        "attn_ln_g": 1.0 + w(ks[11], (1, H), 0.1),
        "attn_ln_b": w(ks[12], (1, H)),
        "w1": w(ks[4], (H, I)), "b1": w(ks[13], (1, I)),
        "w2": w(ks[5], (I, H)), "b2": w(ks[14], (1, H)),
        "out_ln_g": 1.0 + w(ks[15], (1, H), 0.1),
        "out_ln_b": w(ks[6], (1, H)),
    }

    x = jax.random.normal(jax.random.fold_in(key, 123), (B, S, H), dtype=jnp.float32)
    # valid lengths [8, 5] -> HF-style extended additive mask, reshaped to (B,1,S)
    lengths = jnp.array([8, 5], dtype=jnp.int32)
    valid = (jnp.arange(S)[None, :] < lengths[:, None]).astype(jnp.float32)
    mask = ((1.0 - valid) * -10000.0).reshape(B, 1, S)

    kp = pack_params(params)
    out = jax.block_until_ready(bert_layer(x, mask, kp))
    ref = bert_layer_ref(x, mask, params)

    assert out.shape == (B, S, H)
    max_err = float(jnp.max(jnp.abs(out - ref)))
    # softmax divide is exact now; tolerance budget covers bf16 matmul operands
    # (f32 accumulate) vs. the all-f32 reference.
    assert jnp.allclose(out, ref, atol=5e-3, rtol=5e-3), max_err
    print("KERNEL_OK")
</pallas_src>

<mosaic_0001>
module attributes {stable_mosaic.version = 11 : i64} {
  func.func @bert_layer_kernel(%arg0: memref<16x32xf32, #tpu.memory_space<vmem>>, %arg1: memref<2x1x32xf32, #tpu.memory_space<vmem>>, %arg2: memref<32x384xbf16, #tpu.memory_space<vmem>>, %arg3: memref<128x32xbf16, #tpu.memory_space<vmem>>, %arg4: memref<4x128xf32, #tpu.memory_space<vmem>>, %arg5: memref<16x32xf32, #tpu.memory_space<vmem>>) attributes {dimension_semantics = [], scalar_prefetch = 0 : i64, scratch_operands = 0 : i64, tpu.core_type = #tpu.core_type<tc>} {
    %c0 = arith.constant 0 : index
    %c0_0 = arith.constant 0 : index
    %0 = vector.load %arg0[%c0, %c0_0] : memref<16x32xf32, #tpu.memory_space<vmem>>, vector<16x32xf32>
    %c0_1 = arith.constant 0 : index
    %c0_2 = arith.constant 0 : index
    %c0_3 = arith.constant 0 : index
    %1 = vector.load %arg1[%c0_1, %c0_2, %c0_3] : memref<2x1x32xf32, #tpu.memory_space<vmem>>, vector<2x1x32xf32>
    %c0_4 = arith.constant 0 : index
    %c0_5 = arith.constant 0 : index
    %2 = vector.load %arg2[%c0_4, %c0_5] : memref<32x384xbf16, #tpu.memory_space<vmem>>, vector<32x384xbf16>
    %c0_6 = arith.constant 0 : index
    %c0_7 = arith.constant 0 : index
    %3 = vector.load %arg3[%c0_6, %c0_7] : memref<128x32xbf16, #tpu.memory_space<vmem>>, vector<128x32xbf16>
    %c0_8 = arith.constant 0 : index
    %c0_9 = arith.constant 0 : index
    %4 = vector.load %arg4[%c0_8, %c0_9] : memref<4x128xf32, #tpu.memory_space<vmem>>, vector<4x128xf32>
    %5 = vector.extract_strided_slice %4 {offsets = [0, 0], sizes = [1, 96], strides = [1, 1]} : vector<4x128xf32> to vector<1x96xf32>
    %6 = vector.extract_strided_slice %4 {offsets = [1, 0], sizes = [1, 128], strides = [1, 1]} : vector<4x128xf32> to vector<1x128xf32>
    %7 = vector.extract_strided_slice %4 {offsets = [2, 0], sizes = [1, 32], strides = [1, 1]} : vector<4x128xf32> to vector<1x32xf32>
    %8 = vector.extract_strided_slice %4 {offsets = [2, 32], sizes = [1, 32], strides = [1, 1]} : vector<4x128xf32> to vector<1x32xf32>
    %9 = vector.extract_strided_slice %4 {offsets = [2, 64], sizes = [1, 32], strides = [1, 1]} : vector<4x128xf32> to vector<1x32xf32>
    %10 = vector.extract_strided_slice %4 {offsets = [2, 96], sizes = [1, 32], strides = [1, 1]} : vector<4x128xf32> to vector<1x32xf32>
    %11 = vector.extract_strided_slice %4 {offsets = [3, 0], sizes = [1, 32], strides = [1, 1]} : vector<4x128xf32> to vector<1x32xf32>
    %12 = vector.extract_strided_slice %4 {offsets = [3, 32], sizes = [1, 32], strides = [1, 1]} : vector<4x128xf32> to vector<1x32xf32>
    %13 = vector.extract_strided_slice %2 {offsets = [0, 0], sizes = [32, 128], strides = [1, 1]} : vector<32x384xbf16> to vector<32x128xbf16>
    %14 = vector.extract_strided_slice %2 {offsets = [0, 128], sizes = [32, 96], strides = [1, 1]} : vector<32x384xbf16> to vector<32x96xbf16>
    %15 = vector.extract_strided_slice %2 {offsets = [0, 256], sizes = [32, 32], strides = [1, 1]} : vector<32x384xbf16> to vector<32x32xbf16>
    %16 = arith.truncf %0 : vector<16x32xf32> to vector<16x32xbf16>
    %cst = arith.constant dense<0.000000e+00> : vector<16x96xf32>
    %17 = tpu.matmul %16, %14, %cst {dimension_numbers = #tpu.dot_dimension_numbers<[1], [0], [0], [1], [0, 0, 1, 1], [], []>} : vector<16x32xbf16>, vector<32x96xbf16>, vector<16x96xf32> -> vector<16x96xf32>
    %18 = vector.broadcast %5 : vector<1x96xf32> to vector<16x96xf32>
    %19 = arith.addf %17, %18 : vector<16x96xf32>
    %20 = vector.extract_strided_slice %19 {offsets = [0, 0], sizes = [16, 32], strides = [1, 1]} : vector<16x96xf32> to vector<16x32xf32>
    %21 = vector.shape_cast %20 : vector<16x32xf32> to vector<2x8x32xf32>
    %22 = vector.extract_strided_slice %19 {offsets = [0, 32], sizes = [16, 32], strides = [1, 1]} : vector<16x96xf32> to vector<16x32xf32>
    %23 = vector.shape_cast %22 : vector<16x32xf32> to vector<2x8x32xf32>
    %24 = vector.extract_strided_slice %19 {offsets = [0, 64], sizes = [16, 32], strides = [1, 1]} : vector<16x96xf32> to vector<16x32xf32>
    %25 = vector.shape_cast %24 : vector<16x32xf32> to vector<2x8x32xf32>
    %26 = tpu.iota {dimensions = array<i32: 0>} : vector<32x32xi32>
    %27 = arith.sitofp %26 : vector<32x32xi32> to vector<32x32xf32>
    %28 = tpu.iota {dimensions = array<i32: 1>} : vector<32x32xi32>
    %29 = arith.sitofp %28 : vector<32x32xi32> to vector<32x32xf32>
    %cst_10 = arith.constant 1.250000e-01 : f32
    %30 = vector.broadcast %cst_10 : f32 to vector<32x32xf32>
    %31 = arith.mulf %27, %30 : vector<32x32xf32>
    %32 = math.floor %31 : vector<32x32xf32>
    %cst_11 = arith.constant 1.250000e-01 : f32
    %33 = vector.broadcast %cst_11 : f32 to vector<32x32xf32>
    %34 = arith.mulf %29, %33 : vector<32x32xf32>
    %35 = math.floor %34 : vector<32x32xf32>
    %36 = arith.cmpf oeq, %32, %35 : vector<32x32xf32>
    %37 = arith.extui %36 : vector<32x32xi1> to vector<32x32xi32>
    %38 = arith.sitofp %37 : vector<32x32xi32> to vector<32x32xf32>
    %39 = tpu.concatenate %23, %23, %23, %23 in 1 : vector<2x8x32xf32>, vector<2x8x32xf32>, vector<2x8x32xf32>, vector<2x8x32xf32> -> vector<2x32x32xf32>
    %40 = vector.shape_cast %38 : vector<32x32xf32> to vector<1x32x32xf32>
    %41 = vector.broadcast %40 : vector<1x32x32xf32> to vector<2x32x32xf32>
    %42 = arith.mulf %39, %41 : vector<2x32x32xf32>
    %43 = tpu.concatenate %25, %25, %25, %25 in 1 : vector<2x8x32xf32>, vector<2x8x32xf32>, vector<2x8x32xf32>, vector<2x8x32xf32> -> vector<2x32x32xf32>
    %44 = vector.shape_cast %38 : vector<32x32xf32> to vector<1x32x32xf32>
    %45 = vector.broadcast %44 : vector<1x32x32xf32> to vector<2x32x32xf32>
    %46 = arith.mulf %43, %45 : vector<2x32x32xf32>
    %47 = arith.truncf %21 : vector<2x8x32xf32> to vector<2x8x32xbf16>
    %48 = arith.truncf %42 : vector<2x32x32xf32> to vector<2x32x32xbf16>
    "tpu.trace_start"() <{level = 10 : i32, message = "bqc,brc->bqr"}> : () -> ()
    %cst_12 = arith.constant dense<0.000000e+00> : vector<2x8x32xf32>
    %49 = tpu.matmul %47, %48, %cst_12 {dimension_numbers = #tpu.dot_dimension_numbers<[2], [2], [1], [1], [0, 0, 0, 1, 1, 1], [0], [0]>} : vector<2x8x32xbf16>, vector<2x32x32xbf16>, vector<2x8x32xf32> -> vector<2x8x32xf32>
    "tpu.trace_stop"() : () -> ()
    %50 = vector.broadcast %1 : vector<2x1x32xf32> to vector<2x8x32xf32>
    %51 = arith.addf %49, %50 : vector<2x8x32xf32>
    %cst_13 = arith.constant dense<0xFF800000> : vector<2x8xf32>
    %52 = vector.multi_reduction <maximumf>, %51, %cst_13 [2] : vector<2x8x32xf32> to vector<2x8xf32>
    %53 = vector.shape_cast %52 : vector<2x8xf32> to vector<2x8x1xf32>
    %54 = vector.broadcast %53 : vector<2x8x1xf32> to vector<2x8x32xf32>
    %55 = arith.subf %51, %54 : vector<2x8x32xf32>
    %56 = math.exp %55 : vector<2x8x32xf32>
    %57 = arith.truncf %56 : vector<2x8x32xf32> to vector<2x8x32xbf16>
    %58 = arith.truncf %46 : vector<2x32x32xf32> to vector<2x32x32xbf16>
    "tpu.trace_start"() <{level = 10 : i32, message = "bqr,brc->bqc"}> : () -> ()
    %cst_14 = arith.constant dense<0.000000e+00> : vector<2x8x32xf32>
    %59 = tpu.matmul %57, %58, %cst_14 {dimension_numbers = #tpu.dot_dimension_numbers<[2], [1], [1], [2], [0, 0, 0, 1, 1, 2], [0], [0]>} : vector<2x8x32xbf16>, vector<2x32x32xbf16>, vector<2x8x32xf32> -> vector<2x8x32xf32>
    "tpu.trace_stop"() : () -> ()
    %60 = vector.shape_cast %59 : vector<2x8x32xf32> to vector<16x32xf32>
    %61 = vector.shape_cast %56 : vector<2x8x32xf32> to vector<16x32xf32>
    %cst_15 = arith.constant dense<0.000000e+00> : vector<16x32xf32>
    %62 = tpu.matmul %61, %38, %cst_15 {dimension_numbers = #tpu.dot_dimension_numbers<[1], [0], [0], [1], [0, 0, 1, 1], [], []>} : vector<16x32xf32>, vector<32x32xf32>, vector<16x32xf32> -> vector<16x32xf32>
    %63 = arith.divf %60, %62 : vector<16x32xf32>
    %64 = arith.truncf %63 : vector<16x32xf32> to vector<16x32xbf16>
    %cst_16 = arith.constant dense<0.000000e+00> : vector<16x32xf32>
    %65 = tpu.matmul %64, %15, %cst_16 {dimension_numbers = #tpu.dot_dimension_numbers<[1], [0], [0], [1], [0, 0, 1, 1], [], []>} : vector<16x32xbf16>, vector<32x32xbf16>, vector<16x32xf32> -> vector<16x32xf32>
    %66 = vector.broadcast %7 : vector<1x32xf32> to vector<16x32xf32>
    %67 = arith.addf %65, %66 : vector<16x32xf32>
    %68 = arith.addf %67, %0 : vector<16x32xf32>
    %cst_17 = arith.constant dense<0.000000e+00> : vector<16xf32>
    %69 = vector.multi_reduction <add>, %68, %cst_17 [1] : vector<16x32xf32> to vector<16xf32>
    %70 = vector.shape_cast %69 : vector<16xf32> to vector<16x1xf32>
    %cst_18 = arith.constant 3.200000e+01 : f32
    %71 = vector.broadcast %cst_18 : f32 to vector<16x1xf32>
    %72 = arith.divf %70, %71 : vector<16x1xf32>
    %73 = vector.broadcast %72 : vector<16x1xf32> to vector<16x32xf32>
    %74 = arith.subf %68, %73 : vector<16x32xf32>
    %75 = arith.mulf %74, %74 : vector<16x32xf32>
    %cst_19 = arith.constant dense<0.000000e+00> : vector<16xf32>
    %76 = vector.multi_reduction <add>, %75, %cst_19 [1] : vector<16x32xf32> to vector<16xf32>
    %77 = vector.shape_cast %76 : vector<16xf32> to vector<16x1xf32>
    %cst_20 = arith.constant 3.200000e+01 : f32
    %78 = vector.broadcast %cst_20 : f32 to vector<16x1xf32>
    %79 = arith.divf %77, %78 : vector<16x1xf32>
    %80 = vector.broadcast %72 : vector<16x1xf32> to vector<16x32xf32>
    %81 = arith.subf %68, %80 : vector<16x32xf32>
    %cst_21 = arith.constant 9.99999996E-13 : f32
    %82 = vector.broadcast %cst_21 : f32 to vector<16x1xf32>
    %83 = arith.addf %79, %82 : vector<16x1xf32>
    %84 = math.rsqrt %83 : vector<16x1xf32>
    %85 = vector.broadcast %84 : vector<16x1xf32> to vector<16x32xf32>
    %86 = arith.mulf %81, %85 : vector<16x32xf32>
    %87 = vector.broadcast %8 : vector<1x32xf32> to vector<16x32xf32>
    %88 = arith.mulf %86, %87 : vector<16x32xf32>
    %89 = vector.broadcast %9 : vector<1x32xf32> to vector<16x32xf32>
    %90 = arith.addf %88, %89 : vector<16x32xf32>
    %91 = arith.truncf %90 : vector<16x32xf32> to vector<16x32xbf16>
    %cst_22 = arith.constant dense<0.000000e+00> : vector<16x128xf32>
    %92 = tpu.matmul %91, %13, %cst_22 {dimension_numbers = #tpu.dot_dimension_numbers<[1], [0], [0], [1], [0, 0, 1, 1], [], []>} : vector<16x32xbf16>, vector<32x128xbf16>, vector<16x128xf32> -> vector<16x128xf32>
    %93 = vector.broadcast %6 : vector<1x128xf32> to vector<16x128xf32>
    %94 = arith.addf %92, %93 : vector<16x128xf32>
    %95 = arith.mulf %94, %94 : vector<16x128xf32>
    %96 = arith.mulf %94, %95 : vector<16x128xf32>
    %cst_23 = arith.constant 4.471500e-02 : f32
    %97 = vector.broadcast %cst_23 : f32 to vector<16x128xf32>
    %98 = arith.mulf %97, %96 : vector<16x128xf32>
    %99 = arith.addf %94, %98 : vector<16x128xf32>
    %cst_24 = arith.constant 0.797884583 : f32
    %100 = vector.broadcast %cst_24 : f32 to vector<16x128xf32>
    %101 = arith.mulf %100, %99 : vector<16x128xf32>
    %102 = math.tanh %101 : vector<16x128xf32>
    %cst_25 = arith.constant 1.000000e+00 : f32
    %103 = vector.broadcast %cst_25 : f32 to vector<16x128xf32>
    %104 = arith.addf %103, %102 : vector<16x128xf32>
    %cst_26 = arith.constant 5.000000e-01 : f32
    %105 = vector.broadcast %cst_26 : f32 to vector<16x128xf32>
    %106 = arith.mulf %105, %104 : vector<16x128xf32>
    %107 = arith.mulf %94, %106 : vector<16x128xf32>
    %108 = arith.truncf %107 : vector<16x128xf32> to vector<16x128xbf16>
    %cst_27 = arith.constant dense<0.000000e+00> : vector<16x32xf32>
    %109 = tpu.matmul %108, %3, %cst_27 {dimension_numbers = #tpu.dot_dimension_numbers<[1], [0], [0], [1], [0, 0, 1, 1], [], []>} : vector<16x128xbf16>, vector<128x32xbf16>, vector<16x32xf32> -> vector<16x32xf32>
    %110 = vector.broadcast %10 : vector<1x32xf32> to vector<16x32xf32>
    %111 = arith.addf %109, %110 : vector<16x32xf32>
    %112 = arith.addf %111, %90 : vector<16x32xf32>
    %cst_28 = arith.constant dense<0.000000e+00> : vector<16xf32>
    %113 = vector.multi_reduction <add>, %112, %cst_28 [1] : vector<16x32xf32> to vector<16xf32>
    %114 = vector.shape_cast %113 : vector<16xf32> to vector<16x1xf32>
    %cst_29 = arith.constant 3.200000e+01 : f32
    %115 = vector.broadcast %cst_29 : f32 to vector<16x1xf32>
    %116 = arith.divf %114, %115 : vector<16x1xf32>
    %117 = vector.broadcast %116 : vector<16x1xf32> to vector<16x32xf32>
    %118 = arith.subf %112, %117 : vector<16x32xf32>
    %119 = arith.mulf %118, %118 : vector<16x32xf32>
    %cst_30 = arith.constant dense<0.000000e+00> : vector<16xf32>
    %120 = vector.multi_reduction <add>, %119, %cst_30 [1] : vector<16x32xf32> to vector<16xf32>
    %121 = vector.shape_cast %120 : vector<16xf32> to vector<16x1xf32>
    %cst_31 = arith.constant 3.200000e+01 : f32
    %122 = vector.broadcast %cst_31 : f32 to vector<16x1xf32>
    %123 = arith.divf %121, %122 : vector<16x1xf32>
    %124 = vector.broadcast %116 : vector<16x1xf32> to vector<16x32xf32>
    %125 = arith.subf %112, %124 : vector<16x32xf32>
    %cst_32 = arith.constant 9.99999996E-13 : f32
    %126 = vector.broadcast %cst_32 : f32 to vector<16x1xf32>
    %127 = arith.addf %123, %126 : vector<16x1xf32>
    %128 = math.rsqrt %127 : vector<16x1xf32>
    %129 = vector.broadcast %128 : vector<16x1xf32> to vector<16x32xf32>
    %130 = arith.mulf %125, %129 : vector<16x32xf32>
    %131 = vector.broadcast %11 : vector<1x32xf32> to vector<16x32xf32>
    %132 = arith.mulf %130, %131 : vector<16x32xf32>
    %133 = vector.broadcast %12 : vector<1x32xf32> to vector<16x32xf32>
    %134 = arith.addf %132, %133 : vector<16x32xf32>
    %c0_33 = arith.constant 0 : index
    %c0_34 = arith.constant 0 : index
    %135 = vector.load %arg5[%c0_33, %c0_34] : memref<16x32xf32, #tpu.memory_space<vmem>>, vector<16x32xf32>
    tpu.vector_store %arg5[%c0_33, %c0_34], %134 {strides = array<i32>} : memref<16x32xf32, #tpu.memory_space<vmem>>, vector<16x32xf32>,
    return
  }
}

</mosaic_0001>

<bundles_post_ra>
// kernel: tpu_custom_call.1
= control target key start
LH: loop header
LB: loop body
LE: loop exit
PB: predicated region body
PF: predicated region fallthrough
CT: control target
= control target key end

     0   :  { %v52_v1 = vlaneseq  ;;  %v1094_v2 = vmov 0.0   ;;  %vm1095_vm0 = vmmov 0   ;;  %vm68_vm1 = vcmask 261120   ;;  %s1368_s0 = inlined_call_operand.vmem [shape: f32[16,32], index: 0, kind: input, shape index: {}]   ;;  %s1369_s1 = inlined_call_operand.vmem [shape: f32[2,1,32], index: 1, kind: input, shape index: {}]   ;;  %s1370_s2 = inlined_call_operand.vmem [shape: bf16[32,384], index: 2, kind: input, shape index: {}]   ;;  %s1371_s3 = inlined_call_operand.vmem [shape: bf16[128,32], index: 3, kind: input, shape index: {}]   ;;  %s1372_s4 = inlined_call_operand.vmem [shape: f32[4,128], index: 4, kind: input, shape index: {}]   ;;  %s1373_s5 = inlined_call_operand.hbm [shape: f32[16,32], index: 5, kind: output, shape index: {}]  }
   0x1   :  { %v1036_v0 = vld [vmem:[%s1370_s2 + $0x1c] ss:$12 sps:$4 sm:$0xff]   ;;  %920 = vmatprep.subr.bf16.mxu0 %v1094_v2  ;;  %924 = vmatprep.mubr.msk.bf16.mxu0 %vm1095_vm0, %v1094_v2  ;;  %v1039_v3 = vld [vmem:[%s1370_s2 + $0x4] ss:$12 sps:$4 sm:$0xff]  }
   0x2   :  { %921 = vmatpush3.bf16.msra.mxu0 %v1036_v0  ;;  %v1145_v4 = vld [vmem:[%s1368_s0] sm:$0xff]  ;;  %v1147_v5 = vshrl.u32 %v52_v1, 7  ;;  %928 = vmatprep.subr.bf16.mxu1 %v1094_v2  ;;  %v1154_v6 = vld [vmem:[%s1368_s0 + $0x8] sm:$0xff]  ;;  %v123_v7 = vand.u32 127, %v52_v1 }
   0x3   :  { %922 = vmatprep.subr.bf16.mxu0 %v1094_v2  ;;  %932 = vmatprep.mubr.msk.bf16.mxu1 %vm1095_vm0, %v1094_v2  ;;  %v51_v11 = vpack.c.bf16 %v1154_v6, %v1145_v4 }
   0x4   :  { %v116_v8 = vadd.s32 16, %v1147_v5  ;;  %v117_v9 = vadd.s32 24, %v1147_v5  ;;  %v115_v10 = vadd.s32 8, %v1147_v5  ;;  %v124_v12 = vcvt.s32.f32 %v123_v7 }
   0x5   :  { %v118_v13 = vcvt.s32.f32 %v1147_v5 }
   0x6   :  { %923 = vmatpush3.bf16.msra.mxu0 %v1039_v3  ;;  %v120_v14 = vcvt.s32.f32 %v116_v8  ;;  %v121_v15 = vcvt.s32.f32 %v117_v9  ;;  %v119_v16 = vcvt.s32.f32 %v115_v10  ;;  %v133_v17 = vmul.f32 0.125, %v124_v12 }
   0x7   :  { %v125_v18 = vmul.f32 0.125, %v118_v13  ;;  %952 = vmatprep.subr.bf16.mxu0 %v1094_v2 }
   0x8   :  { %v127_v19 = vmul.f32 0.125, %v120_v14  ;;  %v128_v20 = vmul.f32 0.125, %v121_v15  ;;  %v126_v21 = vmul.f32 0.125, %v119_v16  ;;  %v134_v22 = vfloor.f32 %v133_v17 }
   0x9   :  { %925 = vmatmul.mubr.msk.bf16.vlgmr.msra.gmra.mxu0 %vm68_vm1, %v51_v11  ;;  %v129_v23 = vfloor.f32 %v125_v18 }
   0xa   :  { %v131_v24 = vfloor.f32 %v127_v19  ;;  %v132_v25 = vfloor.f32 %v128_v20  ;;  %v130_v26 = vfloor.f32 %v126_v21  ;;  %956 = vmatprep.mubr.msk.bf16.mxu0 %vm1095_vm0, %v1094_v2 }
   0xb   :  { %vm1168_vm2 = vcmp.eq.f32.partialorder %v129_v23, %v134_v22 }
   0xc   :  { %vm1172_vm3 = vcmp.eq.f32.partialorder %v131_v24, %v134_v22  ;;  %vm1176_vm4 = vcmp.eq.f32.partialorder %v132_v25, %v134_v22  ;;  %vm1180_vm5 = vcmp.eq.f32.partialorder %v130_v26, %v134_v22 }
   0xd   :  { %10 = vsyncpa [#allocation3], 0  ;;  %v856_v31 = vsel %vm1172_vm3, 1.0, %v1094_v2  ;;  %v857_v32 = vsel %vm1176_vm4, 1.0, %v1094_v2  ;;  %v854_v33 = vsel %vm1168_vm2, 1.0, %v1094_v2  ;;  %v855_v34 = vsel %vm1180_vm5, 1.0, %v1094_v2 }
   0xe   :  { %v1026_v35 = vpack.i.bf16 %v857_v32, %v856_v31  ;;  %s1096_s0 = smov 32   ;;  %v1021_v36 = vpack.i.bf16 %v855_v34, %v854_v33  ;;  %v54_v38 = vsub.s32 0, %v1147_v5  ;;  %v1202_v39 = vld [vmem:[%s1372_s4] sm:$0xf]  ;;  %s1097_s4 = smov 96  }
   0xf   :  { %s1098_s28 = smov 64   ;;  %v858_v14 = vld [vmem:[%s1369_s1] ss:$0 sm:$0xff]  ;;  %v859_v22 = vld [vmem:[%s1369_s1 + $0x1] ss:$0 sm:$0xff] }
  0x10   :  { %1017 = vrot.lane.b32.xlu0 %v1026_v35, %s1096_s0  ;;  %v55_v40 = vrot.slane %v1202_v39, %v54_v38  ;;  %v1038_v29 = vld [vmem:[%s1370_s2 + $0x18] ss:$12 sps:$4 sm:$0xff]   ;;  %v1041_v30 = vld [vmem:[%s1370_s2] ss:$12 sps:$4 sm:$0xff]  }
  0x11   :  { %v1042_v27 = vld [vmem:[%s1370_s2 + $0x20] ss:$12 sps:$4 sm:$0xff]  }
  0x14   :  { %1022 = vrot.lane.b32.xlu0 %v1021_v36, %s1096_s0 }
  0x82   :  { %v1018_v37 = vpop.permute.xlu0 %1017 }
  0x83   :  { %v1020_v42 = vunpack.i.h.bf16 %v1018_v37  ;;  %v1019_v43 = vunpack.i.l.bf16 %v1018_v37 }
  0x86   :  { %v1023_v41 = vpop.permute.xlu0 %1022 }
  0x87   :  { %v1025_v45 = vunpack.i.h.bf16 %v1023_v41  ;;  %v1024_v46 = vunpack.i.l.bf16 %v1023_v41 }
  0xc9   :  { %v106_v44 = vpop.f32.mrf.mxu0 }
  0xca   :  { %v1205_v47 = vadd.f32 %v106_v44, %v55_v40 }
  0xcb   :  { %v926_v48 = vpop.f32.mrf.mxu0 }
  0xcc   :  { %v165_v49 = vmul.f32 %v1019_v43, %v1205_v47  ;;  %v166_v50 = vmul.f32 %v1020_v42, %v1205_v47  ;;  %v163_v54 = vmul.f32 %v1024_v46, %v1205_v47  ;;  %v164_v55 = vmul.f32 %v1025_v45, %v1205_v47 }
  0xcd   :  { %v109_v51 = vpop.f32.mrf.mxu0  ;;  %v191_v9 = vpack.c.bf16 %v1205_v47, %v1205_v47 }
  0xce   :  { %v1209_v52 = vadd.f32 %v109_v51, %v55_v40  ;;  %v194_v53 = vpack.c.bf16 %v166_v50, %v165_v49  ;;  %v193_v59 = vpack.c.bf16 %v164_v55, %v163_v54 }
  0xcf   :  { %v927_v56 = vpop.f32.mrf.mxu0 }
  0xd0   :  { %213 = vrot.lane.b32.xlu1 %v194_v53, %s1097_s4  ;;  %v169_v57 = vmul.f32 %v1019_v43, %v1209_v52  ;;  %v170_v58 = vmul.f32 %v1020_v42, %v1209_v52  ;;  %v167_v61 = vmul.f32 %v1024_v46, %v1209_v52  ;;  %v168_v62 = vmul.f32 %v1025_v45, %v1209_v52 }
  0xd1   :  { %v192_v13 = vpack.c.bf16 %v1209_v52, %v1209_v52 }
  0xd2   :  { %v196_v60 = vpack.c.bf16 %v170_v58, %v169_v57  ;;  %v195_v63 = vpack.c.bf16 %v168_v62, %v167_v61  ;;  %v1099_v62 = vmov 1.0  }
  0xd4   :  { %211 = vrot.lane.b32.xlu1 %v193_v59, %s1097_s4  ;;  %268 = vrot.lane.b32.xlu0 %v196_v60, %s1097_s4 }
  0xd8   :  { %1027 = vrot.lane.b32.xlu0 %v1026_v35, %s1098_s28  ;;  %266 = vrot.lane.b32.xlu1 %v195_v63, %s1097_s4 }
  0xdc   :  { %1032 = vrot.lane.b32.xlu1 %v1021_v36, %s1098_s28 }
 0x142   :  { %v214_v0 = vpop.permute.xlu1 %213 }
 0x143   :  { %v222_v1 = vsel %vm68_vm1, %v214_v0, 0 }
 0x144   :  { %929 = vmatpush3.bf16.xpose.msra.mxu1 %v222_v1  ;;  %v1043_v1 = vld [vmem:[%s1370_s2 + $0x8] ss:$12 sps:$4 sm:$0xff]  }
 0x145   :  { %930 = vmatprep.subr.bf16.mxu1 %v1094_v2 }
 0x146   :  { %v212_v3 = vpop.permute.xlu1 %211  ;;  %v269_v8 = vpop.permute.xlu0 %268 }
 0x147   :  { %v219_v7 = vsel %vm68_vm1, %v212_v3, 0  ;;  %v277_v10 = vsel %vm68_vm1, %v269_v8, 0 }
 0x14a   :  { %v267_v11 = vpop.permute.xlu1 %266  ;;  %v1028_v21 = vpop.permute.xlu0 %1027 }
 0x14b   :  { %v274_v12 = vsel %vm68_vm1, %v267_v11, 0  ;;  %v1030_v23 = vunpack.i.h.bf16 %v1028_v21  ;;  %v1029_v24 = vunpack.i.l.bf16 %v1028_v21  ;;  %v527_v21 = vsub.s32 2, %v1147_v5 }
 0x14c   :  { %931 = vmatpush3.bf16.xpose.msra.mxu1 %v219_v7 }
 0x14d   :  { %936 = vmatprep.subr.bf16.mxu1 %v1094_v2  ;;  %v186_v33 = vmul.f32 %v1030_v23, %v1205_v47  ;;  %v185_v34 = vmul.f32 %v1029_v24, %v1205_v47  ;;  %v190_v37 = vmul.f32 %v1030_v23, %v1209_v52  ;;  %v189_v38 = vmul.f32 %v1029_v24, %v1209_v52 }
 0x14e   :  { %v1033_v40 = vpop.permute.xlu1 %1032 }
 0x14f   :  { %v334_v41 = vpack.c.bf16 %v186_v33, %v185_v34  ;;  %v1035_v42 = vunpack.i.h.bf16 %v1033_v40  ;;  %v1034_v43 = vunpack.i.l.bf16 %v1033_v40  ;;  %v336_v44 = vpack.c.bf16 %v190_v37, %v189_v38 }
 0x151   :  { %v184_v45 = vmul.f32 %v1035_v42, %v1205_v47  ;;  %v183_v46 = vmul.f32 %v1034_v43, %v1205_v47  ;;  %v188_v48 = vmul.f32 %v1035_v42, %v1209_v52  ;;  %v187_v49 = vmul.f32 %v1034_v43, %v1209_v52 }
 0x153   :  { %933 = vmatmul.mubr.msk.bf16.vlgmr.msra.gmra.mxu1 %vm68_vm1, %v191_v9  ;;  %v333_v50 = vpack.c.bf16 %v184_v45, %v183_v46  ;;  %v335_v51 = vpack.c.bf16 %v188_v48, %v187_v49 }
 0x154   :  { %937 = vmatpush3.bf16.xpose.msra.mxu1 %v277_v10  ;;  %940 = vmatprep.mubr.msk.bf16.mxu1 %vm1095_vm0, %v1094_v2 }
 0x155   :  { %938 = vmatprep.subr.bf16.mxu1 %v1094_v2 }
 0x15c   :  { %939 = vmatpush3.bf16.xpose.msra.mxu1 %v274_v12 }
 0x15d   :  { %944 = vmatprep.subr.bf16.mxu1 %v1094_v2 }
 0x163   :  { %941 = vmatmul.mubr.msk.bf16.vlgmr.msra.gmra.mxu1 %vm68_vm1, %v192_v13 }
 0x164   :  { %948 = vmatprep.mubr.msk.bf16.mxu1 %vm1095_vm0, %v1094_v2 }
 0x213   :  { %v258_v15 = vpop.f32.mrf.mxu1 }
 0x214   :  { %v259_v16 = vadd.f32 %v858_v14, %v258_v15 }
 0x215   :  { %v934_v17 = vpop.f32.mrf.mxu1 }
 0x216   :  { %v319_v18 = vsel %vm68_vm1, %v259_v16, -inf }
 0x217   :  { %v261_v19 = vpop.f32.mrf.mxu1  ;;  %320 = vmax.xlane.f32.xlu0 %v319_v18 }
 0x219   :  { %v935_v20 = vpop.f32.mrf.mxu1 }
 0x223   :  { %v313_v25 = vpop.f32.mrf.mxu1 }
 0x224   :  { %v314_v26 = vadd.f32 %v859_v22, %v313_v25  ;;  %v528_v22 = vrot.slane %v1202_v39, %v527_v21 }
 0x225   :  { %v942_v31 = vpop.f32.mrf.mxu1 }
 0x226   :  { %v322_v32 = vsel %vm68_vm1, %v314_v26, -inf }
 0x227   :  { %323 = vmax.xlane.f32.xlu1 %v322_v32  ;;  %v316_v35 = vpop.f32.mrf.mxu1 }
 0x229   :  { %v943_v36 = vpop.f32.mrf.mxu1 }
 0x22d   :  { %341 = vrot.lane.b32.xlu0 %v334_v41, %s1098_s28 }
 0x231   :  { %392 = vrot.lane.b32.xlu0 %v336_v44, %s1098_s28 }
 0x238   :  { %339 = vrot.lane.b32.xlu1 %v333_v50, %s1098_s28 }
 0x23c   :  { %390 = vrot.lane.b32.xlu1 %v335_v51, %s1098_s28 }
 0x2a0   :  { %v321_v53 = vpop.xlane.xlu0 %320 }
 0x2a1   :  { %v325_v54 = vsub.f32 %v259_v16, %v321_v53 }
 0x2a3   :  { %v327_v55 = vmul.f32 1.442695, %v325_v54 }
 0x2a4   :  { %v342_v56 = vpop.permute.xlu0 %341 }
 0x2a5   :  { %945 = vmatpush3.bf16.msra.mxu1 %v342_v56  ;;  %1052 = vpow2.f32 %v327_v55 }
 0x2a6   :  { %946 = vmatprep.subr.bf16.mxu1 %v1094_v2 }
 0x2a8   :  { %v393_v57 = vpop.permute.xlu0 %392 }
 0x2a9   :  { %953 = vmatpush3.bf16.msra.mxu0 %v393_v57 }
 0x2aa   :  { %954 = vmatprep.subr.bf16.mxu0 %v1094_v2 }
 0x2b0   :  { %v324_v47 = vpop.xlane.xlu1 %323 }
 0x2b1   :  { %v326_v52 = vsub.f32 %v314_v26, %v324_v47 }
 0x2b2   :  { %v1053_v58 = vpop.eup %1052 }
 0x2b3   :  { %v329_v59 = vmul.f32 1.442695, %v326_v52  ;;  %v331_v61 = vpack.c.bf16 %v1053_v58, %v1053_v58 }
 0x2b4   :  { %v340_v60 = vpop.permute.xlu1 %339 }
 0x2b5   :  { %1054 = vpow2.f32 %v329_v59  ;;  %947 = vmatpush3.bf16.msra.mxu1 %v340_v60 }
 0x2b6   :  { %960 = vmatprep.subr.msk.mxu1 %vm1176_vm4, %v1099_v62 }
 0x2b8   :  { %949 = vmatmul.mubr.msk.bf16.vlgmr.msra.gmra.mxu1 %vm68_vm1, %v331_v61  ;;  %v391_v63 = vpop.permute.xlu1 %390 }
 0x2b9   :  { %955 = vmatpush3.bf16.msra.mxu0 %v391_v63  ;;  %968 = vmatprep.mubr.msk.f32.mxu1 %vm68_vm1, %v1053_v58  ;;  %v1044_v63 = vld [vmem:[%s1371_s3 + $0x38] sm:$0xff]  }
 0x2ba   :  { %961 = vmatpush3.msk.msra.mxu1 %vm1176_vm4, %v1099_v62  ;;  %971 = vmatprep.subr.bf16.mxu0 %v1094_v2 }
 0x2bb   :  { %962 = vmatprep.subr.msk.mxu1 %vm1172_vm3, %v1099_v62 }
 0x2bc   :  { %963 = vmatpush3.msk.msra.mxu1 %vm1172_vm3, %v1099_v62 }
 0x2bd   :  { %964 = vmatprep.subr.msk.mxu1 %vm1180_vm5, %v1099_v62 }
 0x2be   :  { %965 = vmatpush3.msk.msra.mxu1 %vm1180_vm5, %v1099_v62 }
 0x2bf   :  { %966 = vmatprep.subr.msk.mxu1 %vm1168_vm2, %v1099_v62 }
 0x2c0   :  { %967 = vmatpush3.msk.msra.mxu1 %vm1168_vm2, %v1099_v62 }
 0x2c1   :  { %979 = vmatprep.subr.bf16.mxu1 %v1094_v2 }
 0x2c2   :  { %v1055_v28 = vpop.eup %1054 }
 0x2c3   :  { %969 = vmatmul.mubr.msk.f32.vlgmr.msra.gmra.mxu1 %vm68_vm1, %v1055_v28  ;;  %v332_v0 = vpack.c.bf16 %v1055_v28, %v1055_v28  ;;  %v1046_v28 = vld [vmem:[%s1371_s3 + $0x28] sm:$0xff]  }
 0x2c4   :  { %980 = vmatpush3.bf16.msra.mxu1 %v1038_v29  ;;  %983 = vmatprep.mubr.msk.bf16.mxu1 %vm1095_vm0, %v1094_v2  ;;  %v1045_v29 = vld [vmem:[%s1371_s3 + $0x30] sm:$0xff]  }
 0x2c5   :  { %957 = vmatmul.mubr.msk.bf16.vlgmr.msra.gmra.mxu0 %vm68_vm1, %v332_v0  ;;  %981 = vmatprep.subr.bf16.mxu1 %v1094_v2  ;;  %v1047_v0 = vld [vmem:[%s1371_s3 + $0x20] sm:$0xff]  }
 0x2c6   :  { %975 = vmatprep.mubr.msk.bf16.mxu0 %vm1095_vm0, %v1094_v2  ;;  %972 = vmatpush3.bf16.msra.mxu0 %v1042_v27  ;;  %v1049_v27 = vld [vmem:[%s1371_s3 + $0x10] sm:$0xff]  }
 0x2c7   :  { %973 = vmatprep.subr.bf16.mxu0 %v1094_v2 }
 0x2c8   :  { %982 = vmatpush3.bf16.msra.mxu1 %v1041_v30  ;;  %v1048_v30 = vld [vmem:[%s1371_s3 + $0x18] sm:$0xff]  }
 0x2ca   :  { %974 = vmatpush3.bf16.msra.mxu0 %v1043_v1  ;;  %v1050_v1 = vld [vmem:[%s1371_s3 + $0x8] sm:$0xff]  }
 0x2cb   :  { %987 = vmatprep.subr.bf16.mxu0 %v1094_v2 }
 0x378   :  { %v382_v3 = vpop.f32.mrf.mxu1 }
 0x37a   :  { %v950_v7 = vpop.f32.mrf.mxu1 }
 0x37b   :  { %v628_v7 = vsub.s32 1, %v1147_v5 }
 0x37c   :  { %v385_v8 = vpop.f32.mrf.mxu1 }
 0x37d   :  { %v629_v8 = vrot.slane %v1202_v39, %v628_v7 }
 0x37e   :  { %v951_v9 = vpop.f32.mrf.mxu1 }
 0x383   :  { %v970_v10 = vpop.f32.mrf.mxu1 }
 0x384   :  { %1056 = vrcp.f32 %v970_v10 }
 0x385   :  { %v433_v11 = vpop.f32.mrf.mxu0  ;;  %v511_v12 = vpop.f32.mrf.mxu1 }
 0x386   :  { %1058 = vrcp.f32 %v511_v12 }
 0x387   :  { %v958_v13 = vpop.f32.mrf.mxu0 }
 0x389   :  { %v436_v14 = vpop.f32.mrf.mxu0 }
 0x38b   :  { %v959_v15 = vpop.f32.mrf.mxu0 }
 0x391   :  { %v1057_v16 = vpop.eup %1056 }
 0x392   :  { %v523_v18 = vmul.f32 %v1057_v16, %v433_v11 }
 0x393   :  { %v1059_v17 = vpop.eup %1058 }
 0x394   :  { %v521_v19 = vmul.f32 %v1059_v17, %v382_v3  ;;  %v1051_v3 = vld [vmem:[%s1371_s3] sm:$0xff]   ;;  %s1100_s3 = smov [#allocation2]  }
 0x395   :  { %s840_s29 = sshll.u32 %s1100_s3, 4  ;;  %s841_s29 = int_to_ptr.vmem [resolvable:$true] %s840_s29 }
 0x396   :  { %v524_v20 = vpack.c.bf16 %v523_v18, %v521_v19  ;;  %p1077_p1 = scmp.lt.s32.totalorder %s841_s29, %s841_s29 }
 0x398   :  { %976 = vmatmul.mubr.msk.bf16.vlgmr.msra.gmra.mxu0 %vm68_vm1, %v524_v20 }
 0x399   :  { %1003 = vmatprep.mubr.msk.bf16.mxu0 %vm1095_vm0, %v1094_v2  ;;  %988 = vmatpush3.bf16.msra.mxu0 %v1044_v63 }
 0x39a   :  { %989 = vmatprep.subr.bf16.mxu0 %v1094_v2 }
 0x39d   :  { %990 = vmatpush3.bf16.msra.mxu0 %v1045_v29 }
 0x39e   :  { %991 = vmatprep.subr.bf16.mxu0 %v1094_v2 }
 0x3a1   :  { %992 = vmatpush3.bf16.msra.mxu0 %v1046_v28 }
 0x3a2   :  { %993 = vmatprep.subr.bf16.mxu0 %v1094_v2 }
 0x3a5   :  { %994 = vmatpush3.bf16.msra.mxu0 %v1047_v0 }
 0x3a6   :  { %995 = vmatprep.subr.bf16.mxu0 %v1094_v2 }
 0x3a9   :  { %996 = vmatpush3.bf16.msra.mxu0 %v1048_v30 }
 0x3aa   :  { %997 = vmatprep.subr.bf16.mxu0 %v1094_v2 }
 0x3ad   :  { %998 = vmatpush3.bf16.msra.mxu0 %v1049_v27 }
 0x3ae   :  { %999 = vmatprep.subr.bf16.mxu0 %v1094_v2 }
 0x3b1   :  { %1000 = vmatpush3.bf16.msra.mxu0 %v1050_v1 }
 0x3b2   :  { %1001 = vmatprep.subr.bf16.mxu0 %v1094_v2 }
 0x3b5   :  { %1002 = vmatpush3.bf16.msra.mxu0 %v1051_v3 }
 0x458   :  { %v578_v23 = vpop.f32.mrf.mxu0 }
 0x459   :  { %v579_v24 = vadd.f32 %v578_v23, %v528_v22 }
 0x45a   :  { %v977_v25 = vpop.f32.mrf.mxu0 }
 0x45b   :  { %v585_v26 = vadd.f32 %v579_v24, %v1145_v4 }
 0x45c   :  { %v581_v31 = vpop.f32.mrf.mxu0 }
 0x45d   :  { %v582_v32 = vadd.f32 %v581_v31, %v528_v22  ;;  %v587_v33 = vsel %vm68_vm1, %v585_v26, 0.0 }
 0x45e   :  { %588 = vadd.xlane.f32.xlu0 %v587_v33  ;;  %v978_v34 = vpop.f32.mrf.mxu0 }
 0x45f   :  { %v586_v35 = vadd.f32 %v582_v32, %v1154_v6 }
 0x461   :  { %v590_v36 = vsel %vm68_vm1, %v586_v35, 0.0 }
 0x462   :  { %591 = vadd.xlane.f32.xlu1 %v590_v36 }
 0x473   :  { %615 = vrot.lane.b32.xlu1 %v528_v22, %s1097_s4 }
 0x477   :  { %749 = vrot.lane.b32.xlu1 %v528_v22, %s1096_s0 }
 0x4e7   :  { %v589_v37 = vpop.xlane.xlu0 %588 }
 0x4e8   :  { %v594_v38 = vmul.f32 0.03125, %v589_v37 }
 0x4ea   :  { %v596_v40 = vsub.f32 %v585_v26, %v594_v38 }
 0x4eb   :  { %v592_v41 = vpop.xlane.xlu1 %591 }
 0x4ec   :  { %v595_v4 = vmul.f32 0.03125, %v592_v41  ;;  %v598_v42 = vmul.f32 %v596_v40, %v596_v40 }
 0x4ee   :  { %v597_v43 = vsub.f32 %v586_v35, %v595_v4  ;;  %v600_v44 = vsel %vm68_vm1, %v598_v42, 0.0 }
 0x4ef   :  { %601 = vadd.xlane.f32.xlu0 %v600_v44  ;;  %v616_v56 = vpop.permute.xlu1 %615 }
 0x4f0   :  { %v599_v45 = vmul.f32 %v597_v43, %v597_v43 }
 0x4f2   :  { %v603_v6 = vsel %vm68_vm1, %v599_v45, 0.0 }
 0x4f3   :  { %604 = vadd.xlane.f32.xlu0 %v603_v6  ;;  %v750_v37 = vpop.permute.xlu1 %749 }
 0x509   :  { %620 = vrot.lane.b32.xlu0 %v528_v22, %s1098_s28 }
 0x578   :  { %v602_v46 = vpop.xlane.xlu0 %601 }
 0x579   :  { %v606_v48 = vmul.f32 0.03125, %v602_v46 }
 0x57b   :  { %v608_v49 = vadd.f32 1e-12, %v606_v48 }
 0x57c   :  { %v605_v50 = vpop.xlane.xlu0 %604 }
 0x57d   :  { %1060 = vrsqrt.f32 %v608_v49  ;;  %v607_v51 = vmul.f32 0.03125, %v605_v50 }
 0x57f   :  { %v609_v53 = vadd.f32 1e-12, %v607_v51 }
 0x580   :  { %v621_v58 = vpop.permute.xlu0 %620 }
 0x581   :  { %1062 = vrsqrt.f32 %v609_v53 }
 0x58a   :  { %v1061_v54 = vpop.eup %1060 }
 0x58b   :  { %v612_v55 = vmul.f32 %v1061_v54, %v596_v40 }
 0x58d   :  { %v618_v52 = vmul.f32 %v616_v56, %v612_v55 }
 0x58e   :  { %v1063_v57 = vpop.eup %1062 }
 0x58f   :  { %v613_v47 = vmul.f32 %v1063_v57, %v597_v43  ;;  %v623_v60 = vadd.f32 %v621_v58, %v618_v52  ;;  %v823_v52 = vsub.s32 3, %v1147_v5 }
 0x591   :  { %v619_v59 = vmul.f32 %v616_v56, %v613_v47 }
 0x593   :  { %v1318_v61 = vadd.f32 %v621_v58, %v619_v59  ;;  %v824_v58 = vrot.slane %v1202_v39, %v823_v52 }
 0x595   :  { %v625_v62 = vpack.c.bf16 %v1318_v61, %v623_v60 }
 0x597   :  { %984 = vmatmul.mubr.msk.bf16.vlgmr.msra.gmra.mxu1 %vm68_vm1, %v625_v62 }
 0x657   :  { %v675_v9 = vpop.f32.mrf.mxu1 }
 0x658   :  { %v676_v10 = vadd.f32 %v675_v9, %v629_v8 }
 0x659   :  { %v985_v11 = vpop.f32.mrf.mxu1 }
 0x65a   :  { %v682_v12 = vmul.f32 %v676_v10, %v676_v10 }
 0x65b   :  { %v678_v13 = vpop.f32.mrf.mxu1 }
 0x65c   :  { %v684_v14 = vmul.f32 %v682_v12, %v676_v10  ;;  %v679_v15 = vadd.f32 %v678_v13, %v629_v8 }
 0x65d   :  { %v986_v16 = vpop.f32.mrf.mxu1 }
 0x65e   :  { %v686_v17 = vmul.f32 0.044715, %v684_v14  ;;  %v683_v18 = vmul.f32 %v679_v15, %v679_v15 }
 0x660   :  { %v688_v2 = vadd.f32 %v686_v17, %v676_v10  ;;  %v685_v19 = vmul.f32 %v683_v18, %v679_v15 }
 0x662   :  { %v690_v20 = vmul.f32 0.7978846, %v688_v2  ;;  %v687_v21 = vmul.f32 0.044715, %v685_v19 }
 0x664   :  { %1064 = vtanh.f32 %v690_v20  ;;  %v689_v22 = vadd.f32 %v687_v21, %v679_v15 }
 0x666   :  { %v691_v23 = vmul.f32 0.7978846, %v689_v22 }
 0x668   :  { %1066 = vtanh.f32 %v691_v23 }
 0x671   :  { %v1065_v24 = vpop.eup %1064 }
 0x672   :  { %v694_v25 = vadd.f32 1.0, %v1065_v24 }
 0x674   :  { %v696_v31 = vmul.f32 0.5, %v694_v25 }
 0x675   :  { %v1067_v26 = vpop.eup %1066 }
 0x676   :  { %v695_v32 = vadd.f32 1.0, %v1067_v26  ;;  %v698_v34 = vmul.f32 %v696_v31, %v676_v10 }
 0x678   :  { %v697_v33 = vmul.f32 0.5, %v695_v32 }
 0x67a   :  { %v699_v35 = vmul.f32 %v697_v33, %v679_v15 }
 0x67c   :  { %v700_v36 = vpack.c.bf16 %v699_v35, %v698_v34 }
 0x67e   :  { %1004 = vmatmul.mubr.bf16.vlgmr.msra.gmra.mxu0 %v700_v36 }
 0x73e   :  { %v786_v38 = vpop.f32.mrf.mxu0 }
 0x73f   :  { %v787_v40 = vadd.f32 %v786_v38, %v750_v37 }
 0x740   :  { %v1005_v41 = vpop.f32.mrf.mxu0 }
 0x741   :  { %v793_v4 = vadd.f32 %v787_v40, %v623_v60 }
 0x742   :  { %v789_v42 = vpop.f32.mrf.mxu0 }
 0x743   :  { %v790_v43 = vadd.f32 %v789_v42, %v750_v37  ;;  %v795_v44 = vsel %vm68_vm1, %v793_v4, 0.0 }
 0x744   :  { %796 = vadd.xlane.f32.xlu1 %v795_v44  ;;  %v1006_v45 = vpop.f32.mrf.mxu0 }
 0x745   :  { %v794_v6 = vadd.f32 %v790_v43, %v1318_v61 }
 0x747   :  { %v798_v46 = vsel %vm68_vm1, %v794_v6, 0.0 }
 0x748   :  { %799 = vadd.xlane.f32.xlu0 %v798_v46 }
 0x7cd   :  { %v797_v48 = vpop.xlane.xlu1 %796 }
 0x7ce   :  { %v801_v49 = vmul.f32 0.03125, %v797_v48 }
 0x7d0   :  { %v803_v50 = vsub.f32 %v793_v4, %v801_v49 }
 0x7d1   :  { %v800_v51 = vpop.xlane.xlu0 %799 }
 0x7d2   :  { %v802_v53 = vmul.f32 0.03125, %v800_v51  ;;  %v805_v54 = vmul.f32 %v803_v50, %v803_v50 }
 0x7d4   :  { %v804_v55 = vsub.f32 %v794_v6, %v802_v53  ;;  %v807_v56 = vsel %vm68_vm1, %v805_v54, 0.0 }
 0x7d5   :  { %808 = vadd.xlane.f32.xlu0 %v807_v56 }
 0x7d6   :  { %v806_v57 = vmul.f32 %v804_v55, %v804_v55 }
 0x7d8   :  { %v810_v47 = vsel %vm68_vm1, %v806_v57, 0.0 }
 0x7d9   :  { %811 = vadd.xlane.f32.xlu1 %v810_v47 }
 0x7eb   :  { %828 = vrot.lane.b32.xlu0 %v824_v58, %s1097_s4  ;;  %s1072_s4 = scalar_lea.vmem %s841_s29, 256 }
 0x7ec   :  { %p1073_p0 = scmp.ne.s32.totalorder %s841_s29, %s1072_s4  ;;  %p1078_p2 = scmp.lt.s32.totalorder %s1072_s4, %s1072_s4 }
 0x7ee   :  { %p1079_p3 = por %p1078_p2, %p1077_p1 }
 0x7f0   :  { %p1080_p4 = pnand %p1079_p3, %p1073_p0 }
 0x85e   :  { %v809_v59 = vpop.xlane.xlu0 %808 }
 0x85f   :  { %v813_v60 = vmul.f32 0.03125, %v809_v59 }
 0x861   :  { %v815_v61 = vadd.f32 1e-12, %v813_v60 }
 0x862   :  { %v812_v62 = vpop.xlane.xlu1 %811  ;;  %v829_v30 = vpop.permute.xlu0 %828 }
 0x863   :  { %1068 = vrsqrt.f32 %v815_v61  ;;  %v814_v63 = vmul.f32 0.03125, %v812_v62 }
 0x865   :  { %v816_v29 = vadd.f32 1e-12, %v814_v63 }
 0x867   :  { %1070 = vrsqrt.f32 %v816_v29 }
 0x870   :  { %v1069_v28 = vpop.eup %1068 }
 0x871   :  { %v819_v0 = vmul.f32 %v1069_v28, %v803_v50 }
 0x873   :  { %v825_v27 = vmul.f32 %v824_v58, %v819_v0 }
 0x874   :  { %v1071_v1 = vpop.eup %1070 }
 0x875   :  { %v820_v3 = vmul.f32 %v1071_v1, %v804_v55  ;;  %v831_v7 = vadd.f32 %v829_v30, %v825_v27 }
 0x877   :  { %v826_v5 = vmul.f32 %v824_v58, %v820_v3  ;;  %833 = vst.msk [vmem:[#allocation2] sm:$0xff] %vm68_vm1, %v831_v7 }
 0x879   :  { %v832_v39 = vadd.f32 %v829_v30, %v826_v5 }
 0x87b   :  { %834 = vst.msk [vmem:[#allocation2 + $0x8] sm:$0xff] %vm68_vm1, %v832_v39 }
 0x87c   :  { %1083 = shalt.err (!%p1080_p4)
}
 0x87d   :  { %s1101_s30 = smov 128   ;;  %s1102_s6 = smov 8  }
 0x87e   :  { %846 = dma.vmem_to_hbm [thread:$0]  %s841_s29, 256, %s1373_s5, [#allocation3], %s1101_s30, %s1101_s30, %s1102_s6  }
 0x87f   :  { %1092 = dma.done.wait [#allocation3], 256  }
 0x880   :  { %1093 = vsyncadd [#allocation3], 4294967040 }
 0x881   :  { %850 = vsyncpa [#allocation3], 1 }

</bundles_post_ra>
